<compile_context>
chip_gen: v5e
topology: v5e:2x2
jax: 0.10.0
libtpu: 0.0.40
codegen_flags: <defaults>
</compile_context>

<pallas_src>
import functools

import jax
import jax.numpy as jnp
from jax.experimental import pallas as pl
from jax.experimental.pallas import tpu as pltpu


def _round_up(a, b):
    return (a + b - 1) // b * b


def _ssm_kernel(x_ref, gamma_ref, beta_ref,
                w1_ref, b1_ref, wssm_ref, bssm_ref, w2_ref, b2_ref,
                o_ref, *, mm_dtype):
    # x_ref: (1, C, T) tile — channels on sublanes, spatial tokens on lanes.
    x = x_ref[0].astype(jnp.float32)                       # (C, T)

    # LayerNorm over the channel axis (sublane reduction), eps=1e-5, biased var.
    mean = jnp.mean(x, axis=0, keepdims=True)              # (1, T)
    diff = x - mean
    var = jnp.mean(diff * diff, axis=0, keepdims=True)
    xn = diff * jax.lax.rsqrt(var + 1e-5)
    xn = xn * gamma_ref[...] + beta_ref[...]               # (C,1) bcast over lanes

    def linear(w_ref, b_ref, v):
        # W is torch-layout (out, in); channel-major form of x @ W.T + b.
        acc = jnp.dot(w_ref[...].astype(mm_dtype), v.astype(mm_dtype),
                      preferred_element_type=jnp.float32)
        return acc + b_ref[...]

    # x1 = SiLU(linear1(xn)); x2 = ssm(SiLU(x1)); out = linear2(x1 * x2)
    # sigmoid goes to the EUP slot, so the SiLU gating overlaps with MXU work.
    h1 = linear(w1_ref, b1_ref, xn)
    x1 = h1 * jax.nn.sigmoid(h1)
    s1 = x1 * jax.nn.sigmoid(x1)
    x2 = linear(wssm_ref, bssm_ref, s1)
    out = linear(w2_ref, b2_ref, x1 * x2)
    o_ref[0] = out.astype(o_ref.dtype)


def selective_state_spaces(x, params, *, tile_hw=None):
    """x: (B, C, H, W) float32. params: torch-layout (out,in) weights + biases."""
    B, C, H, W = x.shape
    HW = H * W
    itemsize = x.dtype.itemsize

    # Spatial tokens are the lane dim: tile must be a multiple of 128.
    # Pick the token-tile so one input tile is ~1 MiB (per-step overhead is
    # ~0.35 us, so bigger tiles amortize it); clamp to sane bounds and to HW.
    if tile_hw is None:
        tile_hw = (1 << 20) // max(C * itemsize, 1)
        tile_hw = max(512, min(tile_hw, 32768))
    hw_pad = _round_up(HW, 128)
    t = min(_round_up(tile_hw, 128), hw_pad)
    hw_pad = _round_up(HW, t)
    n_t = hw_pad // t

    x_cm = x.reshape(B, C, HW)                    # free view, no transpose
    if hw_pad != HW:
        # Tail-safe: padded tokens are computed (finite, no NaN) then sliced off.
        x_cm = jnp.pad(x_cm, ((0, 0), (0, 0), (0, hw_pad - HW)))

    # bf16 matmul operands only pay off when the matmuls dominate (large C);
    # keep f32 at small C so numerics stay faithful to the torch module.
    mm_dtype = jnp.bfloat16 if C >= 256 else jnp.float32

    col = lambda v: v.reshape(C, 1).astype(jnp.float32)
    wcast = lambda w: w.astype(mm_dtype)

    tok_spec = pl.BlockSpec((1, C, t), lambda b, i: (b, 0, i))
    # Weights/biases are grid-invariant (constant index_map), so the pipeline
    # only DMAs them once; default buffering keeps lowering simple and safe.
    mat_spec = pl.BlockSpec((C, C), lambda b, i: (0, 0))
    vec_spec = pl.BlockSpec((C, 1), lambda b, i: (0, 0))

    n_tok = B * hw_pad
    w_itemsize = jnp.dtype(mm_dtype).itemsize
    cost = pl.CostEstimate(
        flops=int(3 * 2 * n_tok * C * C + 12 * n_tok * C),
        transcendentals=int(2 * n_tok * C + n_tok),
        bytes_accessed=int(2 * n_tok * C * itemsize
                           + 3 * C * C * w_itemsize + 5 * C * 4),
    )

    # VMEM budget: in+out token tiles double-buffered + (double-buffered)
    # weights, with 2x headroom; capped at 56 MiB so the same tiling also fits
    # v7x (64 MiB per TensorCore).
    io_bytes = 2 * 2 * C * t * itemsize
    w_bytes = 2 * (3 * C * C * w_itemsize + 5 * C * 4)
    vmem_limit = int(min(max(2 * (io_bytes + w_bytes), 32 * 2**20), 56 * 2**20))

    out_cm = pl.pallas_call(
        functools.partial(_ssm_kernel, mm_dtype=mm_dtype),
        out_shape=jax.ShapeDtypeStruct((B, C, hw_pad), x.dtype),
        grid_spec=pltpu.PrefetchScalarGridSpec(
            num_scalar_prefetch=0,
            grid=(B, n_t),
            in_specs=[tok_spec,                     # x (B, C, HWp)
                      vec_spec, vec_spec,           # ln gamma, beta (C,1)
                      mat_spec, vec_spec,           # linear1 W, b
                      mat_spec, vec_spec,           # ssm     W, b
                      mat_spec, vec_spec],          # linear2 W, b
            out_specs=tok_spec,
        ),
        compiler_params=pltpu.CompilerParams(
            dimension_semantics=("parallel", "parallel"),
            vmem_limit_bytes=vmem_limit),
        cost_estimate=cost,
    )(x_cm,
      col(params["ln_gamma"]), col(params["ln_beta"]),
      wcast(params["w1"]), col(params["b1"]),
      wcast(params["w_ssm"]), col(params["b_ssm"]),
      wcast(params["w2"]), col(params["b2"]))

    if hw_pad != HW:
        out_cm = out_cm[:, :, :HW]
    return out_cm.reshape(B, C, H, W)


def _reference(x, params):
    B, C, H, W = x.shape
    xt = jnp.transpose(x.reshape(B, C, H * W), (0, 2, 1))      # (B, HW, C)
    mean = jnp.mean(xt, axis=-1, keepdims=True)
    var = jnp.mean((xt - mean) ** 2, axis=-1, keepdims=True)
    xn = (xt - mean) / jnp.sqrt(var + 1e-5) * params["ln_gamma"] + params["ln_beta"]
    silu = lambda v: v * jax.nn.sigmoid(v)
    x1 = silu(xn @ params["w1"].T + params["b1"])
    x2 = silu(x1) @ params["w_ssm"].T + params["b_ssm"]
    out = (x1 * x2) @ params["w2"].T + params["b2"]
    return jnp.transpose(out, (0, 2, 1)).reshape(B, C, H, W)


def init_params(key, C):
    ks = jax.random.split(key, 6)
    s = float(1.0 / (C ** 0.5))
    return {
        "ln_gamma": jnp.ones((C,), jnp.float32),
        "ln_beta": jnp.zeros((C,), jnp.float32),
        # torch nn.Linear layout: W is (out, in); forward = x @ W.T + b.
        "w1": jax.random.uniform(ks[0], (C, C), jnp.float32, -s, s),
        "b1": jax.random.uniform(ks[1], (C,), jnp.float32, -s, s),
        "w_ssm": jax.random.uniform(ks[2], (C, C), jnp.float32, -s, s),
        "b_ssm": jax.random.uniform(ks[3], (C,), jnp.float32, -s, s),
        "w2": jax.random.uniform(ks[4], (C, C), jnp.float32, -s, s),
        "b2": jax.random.uniform(ks[5], (C,), jnp.float32, -s, s),
    }


if __name__ == "__main__":
    key = jax.random.PRNGKey(0)
    kx, kp = jax.random.split(key)
    B, C, H, W = 2, 4, 16, 16
    x = jax.random.normal(kx, (B, C, H, W), jnp.float32)
    params = init_params(kp, C)

    fn = jax.jit(selective_state_spaces)
    out = jax.block_until_ready(fn(x, params))

    ref = _reference(x, params)
    assert out.shape == (B, C, H, W)
    assert jnp.allclose(out, ref, atol=1e-5, rtol=1e-5), "mismatch vs reference"
    print("KERNEL_OK")
</pallas_src>

<mosaic_0001>
module attributes {stable_mosaic.version = 11 : i64} {
  func.func @_ssm_kernel(%arg0: i32, %arg1: i32, %arg2: memref<1x4x256xf32, #tpu.memory_space<vmem>>, %arg3: memref<4x1xf32, #tpu.memory_space<vmem>>, %arg4: memref<4x1xf32, #tpu.memory_space<vmem>>, %arg5: memref<4x4xf32, #tpu.memory_space<vmem>>, %arg6: memref<4x1xf32, #tpu.memory_space<vmem>>, %arg7: memref<4x4xf32, #tpu.memory_space<vmem>>, %arg8: memref<4x1xf32, #tpu.memory_space<vmem>>, %arg9: memref<4x4xf32, #tpu.memory_space<vmem>>, %arg10: memref<4x1xf32, #tpu.memory_space<vmem>>, %arg11: memref<1x4x256xf32, #tpu.memory_space<vmem>>) attributes {dimension_semantics = [#tpu.dimension_semantics<parallel>, #tpu.dimension_semantics<parallel>], iteration_bounds = array<i64: 2, 1>, scalar_prefetch = 0 : i64, scratch_operands = 0 : i64, tpu.core_type = #tpu.core_type<tc>, window_params = [{transform_indices = @transform_0, window_bounds = array<i64: 1, 4, 256>}, {pipeline_mode = #tpu.pipeline_mode<synchronous>, transform_indices = @transform_1, window_bounds = array<i64: 4, 1>}, {pipeline_mode = #tpu.pipeline_mode<synchronous>, transform_indices = @transform_2, window_bounds = array<i64: 4, 1>}, {pipeline_mode = #tpu.pipeline_mode<synchronous>, transform_indices = @transform_3, window_bounds = array<i64: 4, 4>}, {pipeline_mode = #tpu.pipeline_mode<synchronous>, transform_indices = @transform_4, window_bounds = array<i64: 4, 1>}, {pipeline_mode = #tpu.pipeline_mode<synchronous>, transform_indices = @transform_5, window_bounds = array<i64: 4, 4>}, {pipeline_mode = #tpu.pipeline_mode<synchronous>, transform_indices = @transform_6, window_bounds = array<i64: 4, 1>}, {pipeline_mode = #tpu.pipeline_mode<synchronous>, transform_indices = @transform_7, window_bounds = array<i64: 4, 4>}, {pipeline_mode = #tpu.pipeline_mode<synchronous>, transform_indices = @transform_8, window_bounds = array<i64: 4, 1>}, {transform_indices = @transform_9, window_bounds = array<i64: 1, 4, 256>}]} {
    %c0 = arith.constant 0 : index
    %c0_0 = arith.constant 0 : index
    %c0_1 = arith.constant 0 : index
    %0 = vector.load %arg2[%c0, %c0_0, %c0_1] : memref<1x4x256xf32, #tpu.memory_space<vmem>>, vector<1x4x256xf32>
    %1 = vector.shape_cast %0 : vector<1x4x256xf32> to vector<4x256xf32>
    %cst = arith.constant dense<0.000000e+00> : vector<256xf32>
    %2 = vector.multi_reduction <add>, %1, %cst [0] : vector<4x256xf32> to vector<256xf32>
    %3 = vector.shape_cast %2 : vector<256xf32> to vector<1x256xf32>
    %cst_2 = arith.constant 4.000000e+00 : f32
    %4 = vector.broadcast %cst_2 : f32 to vector<1x256xf32>
    %5 = arith.divf %3, %4 : vector<1x256xf32>
    %6 = vector.broadcast %5 : vector<1x256xf32> to vector<4x256xf32>
    %7 = arith.subf %1, %6 : vector<4x256xf32>
    %8 = arith.mulf %7, %7 : vector<4x256xf32>
    %cst_3 = arith.constant dense<0.000000e+00> : vector<256xf32>
    %9 = vector.multi_reduction <add>, %8, %cst_3 [0] : vector<4x256xf32> to vector<256xf32>
    %10 = vector.shape_cast %9 : vector<256xf32> to vector<1x256xf32>
    %cst_4 = arith.constant 4.000000e+00 : f32
    %11 = vector.broadcast %cst_4 : f32 to vector<1x256xf32>
    %12 = arith.divf %10, %11 : vector<1x256xf32>
    %cst_5 = arith.constant 9.99999974E-6 : f32
    %13 = vector.broadcast %cst_5 : f32 to vector<1x256xf32>
    %14 = arith.addf %12, %13 : vector<1x256xf32>
    %15 = math.rsqrt %14 : vector<1x256xf32>
    %16 = vector.broadcast %15 : vector<1x256xf32> to vector<4x256xf32>
    %17 = arith.mulf %7, %16 : vector<4x256xf32>
    %c0_6 = arith.constant 0 : index
    %c0_7 = arith.constant 0 : index
    %18 = vector.load %arg3[%c0_6, %c0_7] : memref<4x1xf32, #tpu.memory_space<vmem>>, vector<4x1xf32>
    %19 = vector.broadcast %18 : vector<4x1xf32> to vector<4x256xf32>
    %20 = arith.mulf %17, %19 : vector<4x256xf32>
    %c0_8 = arith.constant 0 : index
    %c0_9 = arith.constant 0 : index
    %21 = vector.load %arg4[%c0_8, %c0_9] : memref<4x1xf32, #tpu.memory_space<vmem>>, vector<4x1xf32>
    %22 = vector.broadcast %21 : vector<4x1xf32> to vector<4x256xf32>
    %23 = arith.addf %20, %22 : vector<4x256xf32>
    %c0_10 = arith.constant 0 : index
    %c0_11 = arith.constant 0 : index
    %24 = vector.load %arg5[%c0_10, %c0_11] : memref<4x4xf32, #tpu.memory_space<vmem>>, vector<4x4xf32>
    %cst_12 = arith.constant dense<0.000000e+00> : vector<4x256xf32>
    %25 = tpu.matmul %24, %23, %cst_12 {dimension_numbers = #tpu.dot_dimension_numbers<[1], [0], [0], [1], [0, 0, 1, 1], [], []>} : vector<4x4xf32>, vector<4x256xf32>, vector<4x256xf32> -> vector<4x256xf32>
    %c0_13 = arith.constant 0 : index
    %c0_14 = arith.constant 0 : index
    %26 = vector.load %arg6[%c0_13, %c0_14] : memref<4x1xf32, #tpu.memory_space<vmem>>, vector<4x1xf32>
    %27 = vector.broadcast %26 : vector<4x1xf32> to vector<4x256xf32>
    %28 = arith.addf %25, %27 : vector<4x256xf32>
    %29 = arith.negf %28 : vector<4x256xf32>
    %30 = math.exp %29 : vector<4x256xf32>
    %cst_15 = arith.constant 1.000000e+00 : f32
    %31 = vector.broadcast %cst_15 : f32 to vector<4x256xf32>
    %32 = arith.addf %31, %30 : vector<4x256xf32>
    %33 = arith.divf %31, %32 : vector<4x256xf32>
    %34 = arith.mulf %28, %33 : vector<4x256xf32>
    %35 = arith.negf %34 : vector<4x256xf32>
    %36 = math.exp %35 : vector<4x256xf32>
    %cst_16 = arith.constant 1.000000e+00 : f32
    %37 = vector.broadcast %cst_16 : f32 to vector<4x256xf32>
    %38 = arith.addf %37, %36 : vector<4x256xf32>
    %39 = arith.divf %37, %38 : vector<4x256xf32>
    %40 = arith.mulf %34, %39 : vector<4x256xf32>
    %c0_17 = arith.constant 0 : index
    %c0_18 = arith.constant 0 : index
    %41 = vector.load %arg7[%c0_17, %c0_18] : memref<4x4xf32, #tpu.memory_space<vmem>>, vector<4x4xf32>
    %cst_19 = arith.constant dense<0.000000e+00> : vector<4x256xf32>
    %42 = tpu.matmul %41, %40, %cst_19 {dimension_numbers = #tpu.dot_dimension_numbers<[1], [0], [0], [1], [0, 0, 1, 1], [], []>} : vector<4x4xf32>, vector<4x256xf32>, vector<4x256xf32> -> vector<4x256xf32>
    %c0_20 = arith.constant 0 : index
    %c0_21 = arith.constant 0 : index
    %43 = vector.load %arg8[%c0_20, %c0_21] : memref<4x1xf32, #tpu.memory_space<vmem>>, vector<4x1xf32>
    %44 = vector.broadcast %43 : vector<4x1xf32> to vector<4x256xf32>
    %45 = arith.addf %42, %44 : vector<4x256xf32>
    %46 = arith.mulf %34, %45 : vector<4x256xf32>
    %c0_22 = arith.constant 0 : index
    %c0_23 = arith.constant 0 : index
    %47 = vector.load %arg9[%c0_22, %c0_23] : memref<4x4xf32, #tpu.memory_space<vmem>>, vector<4x4xf32>
    %cst_24 = arith.constant dense<0.000000e+00> : vector<4x256xf32>
    %48 = tpu.matmul %47, %46, %cst_24 {dimension_numbers = #tpu.dot_dimension_numbers<[1], [0], [0], [1], [0, 0, 1, 1], [], []>} : vector<4x4xf32>, vector<4x256xf32>, vector<4x256xf32> -> vector<4x256xf32>
    %c0_25 = arith.constant 0 : index
    %c0_26 = arith.constant 0 : index
    %49 = vector.load %arg10[%c0_25, %c0_26] : memref<4x1xf32, #tpu.memory_space<vmem>>, vector<4x1xf32>
    %50 = vector.broadcast %49 : vector<4x1xf32> to vector<4x256xf32>
    %51 = arith.addf %48, %50 : vector<4x256xf32>
    %c0_27 = arith.constant 0 : index
    %c0_28 = arith.constant 0 : index
    %c0_29 = arith.constant 0 : index
    %52 = vector.load %arg11[%c0_27, %c0_28, %c0_29] : memref<1x4x256xf32, #tpu.memory_space<vmem>>, vector<1x4x256xf32>
    %53 = vector.shape_cast %52 : vector<1x4x256xf32> to vector<4x256xf32>
    %54 = vector.shape_cast %51 : vector<4x256xf32> to vector<1x4x256xf32>
    tpu.vector_store %arg11[%c0_27, %c0_28, %c0_29], %54 {strides = array<i32>} : memref<1x4x256xf32, #tpu.memory_space<vmem>>, vector<1x4x256xf32>,
    return
  }
  func.func @transform_0(%arg0: i32, %arg1: i32) -> (i32, i32, i32) {
    %c0_i32 = arith.constant 0 : i32
    %c0_i32_0 = arith.constant 0 : i32
    return %arg0, %c0_i32, %arg1 : i32, i32, i32
  }
  func.func @transform_1(%arg0: i32, %arg1: i32) -> (i32, i32) {
    %c0_i32 = arith.constant 0 : i32
    %c0_i32_0 = arith.constant 0 : i32
    %c0_i32_1 = arith.constant 0 : i32
    return %c0_i32, %c0_i32_0 : i32, i32
  }
  func.func @transform_2(%arg0: i32, %arg1: i32) -> (i32, i32) {
    %c0_i32 = arith.constant 0 : i32
    %c0_i32_0 = arith.constant 0 : i32
    %c0_i32_1 = arith.constant 0 : i32
    return %c0_i32, %c0_i32_0 : i32, i32
  }
  func.func @transform_3(%arg0: i32, %arg1: i32) -> (i32, i32) {
    %c0_i32 = arith.constant 0 : i32
    %c0_i32_0 = arith.constant 0 : i32
    %c0_i32_1 = arith.constant 0 : i32
    return %c0_i32, %c0_i32_0 : i32, i32
  }
  func.func @transform_4(%arg0: i32, %arg1: i32) -> (i32, i32) {
    %c0_i32 = arith.constant 0 : i32
    %c0_i32_0 = arith.constant 0 : i32
    %c0_i32_1 = arith.constant 0 : i32
    return %c0_i32, %c0_i32_0 : i32, i32
  }
  func.func @transform_5(%arg0: i32, %arg1: i32) -> (i32, i32) {
    %c0_i32 = arith.constant 0 : i32
    %c0_i32_0 = arith.constant 0 : i32
    %c0_i32_1 = arith.constant 0 : i32
    return %c0_i32, %c0_i32_0 : i32, i32
  }
  func.func @transform_6(%arg0: i32, %arg1: i32) -> (i32, i32) {
    %c0_i32 = arith.constant 0 : i32
    %c0_i32_0 = arith.constant 0 : i32
    %c0_i32_1 = arith.constant 0 : i32
    return %c0_i32, %c0_i32_0 : i32, i32
  }
  func.func @transform_7(%arg0: i32, %arg1: i32) -> (i32, i32) {
    %c0_i32 = arith.constant 0 : i32
    %c0_i32_0 = arith.constant 0 : i32
    %c0_i32_1 = arith.constant 0 : i32
    return %c0_i32, %c0_i32_0 : i32, i32
  }
  func.func @transform_8(%arg0: i32, %arg1: i32) -> (i32, i32) {
    %c0_i32 = arith.constant 0 : i32
    %c0_i32_0 = arith.constant 0 : i32
    %c0_i32_1 = arith.constant 0 : i32
    return %c0_i32, %c0_i32_0 : i32, i32
  }
  func.func @transform_9(%arg0: i32, %arg1: i32) -> (i32, i32, i32) {
    %c0_i32 = arith.constant 0 : i32
    %c0_i32_0 = arith.constant 0 : i32
    return %arg0, %c0_i32, %arg1 : i32, i32, i32
  }
}

</mosaic_0001>

<bundles_post_ra>
// kernel: selective_state_spaces.1
= control target key start
LH: loop header
LB: loop body
LE: loop exit
PB: predicated region body
PF: predicated region fallthrough
CT: control target
= control target key end

     0   :  { %s986_s30 = smov 0   ;;  %s988_s10 = smov 0   ;;  %s1069_s0 = inlined_call_operand.vmem [shape: f32[2,4,256], index: 0, kind: input, shape index: {}]   ;;  %s1070_s1 = inlined_call_operand.vmem [shape: f32[4,1], index: 1, kind: input, shape index: {}]   ;;  %s1071_s2 = inlined_call_operand.vmem [shape: f32[4,1], index: 2, kind: input, shape index: {}]   ;;  %s1072_s3 = inlined_call_operand.vmem [shape: f32[4,4], index: 3, kind: input, shape index: {}]   ;;  %s1073_s4 = inlined_call_operand.vmem [shape: f32[4,1], index: 4, kind: input, shape index: {}]   ;;  %s1074_s5 = inlined_call_operand.vmem [shape: f32[4,4], index: 5, kind: input, shape index: {}]   ;;  %s1075_s6 = inlined_call_operand.vmem [shape: f32[4,1], index: 6, kind: input, shape index: {}]   ;;  %s1076_s7 = inlined_call_operand.vmem [shape: f32[4,4], index: 7, kind: input, shape index: {}]   ;;  %s1077_s8 = inlined_call_operand.vmem [shape: f32[4,1], index: 8, kind: input, shape index: {}]   ;;  %s1078_s9 = inlined_call_operand.vmem [shape: f32[2,4,256], index: 9, kind: output, shape index: {}]  }
   0x1   :  { %s990_s11 = smov 0  }
   0x2 LB: > { %s31_s12 = sadd.s32 1, %s927_s10  ;;  %p832_p0 = scmp.ge.s32.totalorder %s931_s11, 1  ;;  %s931_s11 = sphi %s990_s11, %s19_s11   ;;  %s927_s10 = sphi %s988_s10, %s1080_s10   ;;  %s923_s30 = sphi %s986_s30, %s1079_s30  }
   0x3   : > { %p33_p1 = scmp.ge.s32.totalorder %s31_s12, 2  ;;  %p308_p2 = scmp.lt.s32.totalorder %s931_s11, 3 }
   0x5   : > { %s1082_s12 = smov (%p33_p1, %s31_s12), 0  ;;  %p309_p3 = pnand %p832_p0, %p308_p2 }
   0x6   : > { %p353_p4 = scmp.lt.s32.totalorder (!%p309_p3), %s923_s30, 1 }
   0x7   : > { %312 = sbr.rel (%p309_p3) target bundleno = 609 (0x261), region = 56 }
   0xc   : > { %v460_v0 = vld [vmem:[%s1070_s1] sm:$0xf]  ;;  %v933_v1 = vmov 0   ;;  %s1084_s30 = smov (!%p353_p4, %s923_s30), 1  ;;  %v934_v4 = vmov 4.0   ;;  %vm379_vm0 = vcmask 1043456  }
   0xd   : > { %884 = vset.pattern.permute.xlu0 %v933_v1  ;;  %885 = vset.pattern.permute.xlu1 %v933_v1  ;;  %s855_s15 = sshll.u32 %s1084_s30, 3  ;;  %v471_v2 = vld [vmem:[%s1071_s2] sm:$0xf]  ;;  %887 = vrcp.f32 %v934_v4  ;;  %vm493_vm8 = vcmask 31744  }
   0xe   : > { %463 = vperm.xlu0 %884, %v460_v0   ;;  %886 = vset.pattern.permute.xlu2 %v933_v1  ;;  %s360_s18 = scalar_lea.vmem %s1069_s0, %s855_s15  ;;  %s370_s19 = scalar_lea.vmem %s1078_s9, %s855_s15 }
   0xf   : > { %v372_v3 = vld [vmem:[%s360_s18] sm:$0xff] }
  0x10   : > { %374 = vst [vmem:[#allocation1] ss:$2 sm:$0xff] %v372_v3 }
  0x13   : > { %v888_v10 = vpop.eup %887 }
  0x14   : > { %v395_v13 = vmul.f32 4.0, %v888_v10  ;;  %vm399_vm1 = vweird.f32 %v888_v10 }
  0x16   : > { %474 = vperm.xlu0 %884, %v471_v2   ;;  %v396_v16 = vsub.f32 1.0, %v395_v13 }
  0x17   : > { %v376_v5 = vld.sshfl [vmem:[#allocation1 + $0x8] sm:$0xff pattern:$0x75316420]  ;;  %v375_v7 = vld.sshfl [vmem:[#allocation1] sm:$0xff pattern:$0x75316420] }
  0x18   : > { %v387_v6 = vsel %vm379_vm0, %v376_v5, 0.0  ;;  %v380_v9 = vsel %vm379_vm0, %v375_v7, 0.0  ;;  %v397_v19 = vmul.f32 %v888_v10, %v396_v16  ;;  %v622_v7 = vld [vmem:[%s1075_s6] sm:$0xf] }
  0x19   : > { %v388_v8 = vrot.slane %v387_v6, 4  ;;  %v381_v11 = vrot.slane %v380_v9, 4 }
  0x1a   : > { %v398_v22 = vadd.f32 %v888_v10, %v397_v19 }
  0x1b   : > { %v389_v12 = vadd.f32 %v388_v8, %v387_v6  ;;  %v382_v14 = vadd.f32 %v381_v11, %v380_v9  ;;  %v483_v6 = vld [vmem:[%s1073_s4] sm:$0xf]  ;;  %v935_v8 = vmov 839922192  }
  0x1c   : > { %v400_v25 = vsel %vm399_vm1, %v888_v10, %v398_v22  ;;  %486 = vperm.xlu1 %885, %v483_v6   ;;  %v466_v9 = vunpack.c.l.s4 %v935_v8 }
  0x1d   : > { %v390_v15 = vrot.slane %v389_v12, 2  ;;  %v383_v17 = vrot.slane %v382_v14, 2 }
  0x1e   : > { %v467_v11 = vunpack.c.0.s8 %v466_v9 }
  0x1f   : > { %v391_v18 = vadd.f32 %v390_v15, %v389_v12  ;;  %v384_v20 = vadd.f32 %v383_v17, %v382_v14  ;;  %v482_v17 = vld [vmem:[%s1072_s3] sm:$0xf] }
  0x21   : > { %v392_v21 = vrot.slane %v391_v18, 1  ;;  %v385_v23 = vrot.slane %v384_v20, 1 }
  0x23   : > { %v393_v24 = vadd.f32 %v392_v21, %v391_v18  ;;  %v386_v26 = vadd.f32 %v385_v23, %v384_v20 }
  0x24   : > { %625 = vperm.xlu1 %885, %v622_v7  }
  0x25   : > { %v402_v27 = vmul.f32 %v400_v25, %v393_v24  ;;  %v401_v28 = vmul.f32 %v400_v25, %v386_v26 }
  0x27   : > { %v405_v29 = vrot.slane %v402_v27, 4 }
  0x29   : > { %v406_v30 = vsel %vm379_vm0, %v401_v28, %v405_v29 }
  0x2a   : > { %v408_v31 = vsub.f32 %v372_v3, %v406_v30 }
  0x2c   : > { %v409_v32 = vmul.f32 %v408_v31, %v408_v31 }
  0x2e   : > { %411 = vst [vmem:[#allocation1] ss:$2 sm:$0xff] %v409_v32 }
  0x35   : > { %v413_v33 = vld.sshfl [vmem:[#allocation1 + $0x8] sm:$0xff pattern:$0x75316420]  ;;  %v412_v35 = vld.sshfl [vmem:[#allocation1] sm:$0xff pattern:$0x75316420] }
  0x36   : > { %v423_v34 = vsel %vm379_vm0, %v413_v33, 0.0  ;;  %v416_v37 = vsel %vm379_vm0, %v412_v35, 0.0 }
  0x37   : > { %v424_v36 = vrot.slane %v423_v34, 4  ;;  %v417_v38 = vrot.slane %v416_v37, 4 }
  0x39   : > { %v425_v39 = vadd.f32 %v424_v36, %v423_v34  ;;  %v418_v40 = vadd.f32 %v417_v38, %v416_v37 }
  0x3b   : > { %v426_v41 = vrot.slane %v425_v39, 2  ;;  %v419_v42 = vrot.slane %v418_v40, 2 }
  0x3d   : > { %v427_v43 = vadd.f32 %v426_v41, %v425_v39  ;;  %v420_v44 = vadd.f32 %v419_v42, %v418_v40 }
  0x3f   : > { %v428_v45 = vrot.slane %v427_v43, 1  ;;  %v421_v46 = vrot.slane %v420_v44, 1 }
  0x41   : > { %v429_v47 = vadd.f32 %v428_v45, %v427_v43  ;;  %v422_v48 = vadd.f32 %v421_v46, %v420_v44 }
  0x43   : > { %v431_v49 = vmul.f32 %v429_v47, %v400_v25  ;;  %v430_v50 = vmul.f32 %v422_v48, %v400_v25 }
  0x45   : > { %v433_v51 = vadd.f32 1e-05, %v431_v49  ;;  %v432_v52 = vadd.f32 1e-05, %v430_v50 }
  0x47   : > { %889 = vrsqrt.f32 %v433_v51  ;;  %vm450_vm2 = vweird.f32 %v433_v51  ;;  %vm440_vm5 = vweird.f32 %v432_v52 }
  0x48   : > { %891 = vrsqrt.f32 %v432_v52 }
  0x4d   : > { %v890_v53 = vpop.eup %889 }
  0x4e   : > { %v445_v54 = vmul.f32 %v890_v53, %v433_v51  ;;  %v892_v55 = vpop.eup %891  ;;  %vm451_vm3 = vweird.f32 %v890_v53 }
  0x4f   : > { %v435_v56 = vmul.f32 %v892_v55, %v432_v52  ;;  %vm452_vm4 = vmor %vm450_vm2, %vm451_vm3  ;;  %vm441_vm6 = vweird.f32 %v892_v55 }
  0x50   : > { %v446_v57 = vmul.f32 %v890_v53, %v445_v54  ;;  %vm442_vm7 = vmor %vm440_vm5, %vm441_vm6 }
  0x51   : > { %v436_v58 = vmul.f32 %v892_v55, %v435_v56 }
  0x52   : > { %v447_v59 = vmul.f32 0.5, %v446_v57 }
  0x53   : > { %v437_v60 = vmul.f32 0.5, %v436_v58 }
  0x54   : > { %v448_v61 = vsub.f32 1.5, %v447_v59 }
  0x55   : > { %v438_v62 = vsub.f32 1.5, %v437_v60 }
  0x56   : > { %v449_v63 = vmul.f32 %v890_v53, %v448_v61 }
  0x57   : > { %v439_v0 = vmul.f32 %v892_v55, %v438_v62 }
  0x58   : > { %v453_v1 = vsel %vm452_vm4, %v890_v53, %v449_v63 }
  0x59   : > { %v456_v2 = vrot.slane %v453_v1, 4  ;;  %v443_v3 = vsel %vm442_vm7, %v892_v55, %v439_v0 }
  0x5b   : > { %v457_v4 = vsel %vm379_vm0, %v443_v3, %v456_v2 }
  0x5c   : > { %v459_v5 = vmul.f32 %v457_v4, %v408_v31 }
  0x80   : > { %v464_v10 = vpop.permute.xlu0 %463 }
  0x81   : > { %v468_v12 = vperm.slane %v464_v10, %v467_v11 }
  0x83   : > { %v470_v14 = vmul.f32 %v468_v12, %v459_v5 }
  0x88   : > { %v475_v13 = vpop.permute.xlu0 %474 }
  0x89   : > { %v479_v15 = vperm.slane %v475_v13, %v467_v11 }
  0x8b   : > { %v481_v16 = vadd.f32 %v479_v15, %v470_v14 }
  0x8d   : > { %490 = vst [vmem:[#allocation1] ss:$2 sm:$0xff] %v481_v16  ;;  %v621_v16 = vld [vmem:[%s1074_s5] sm:$0xf] }
  0x8e   : > { %v487_v20 = vpop.permute.xlu1 %486 }
  0x94   : > { %v491_v18 = vld.sshfl [vmem:[#allocation1] sm:$0xff pattern:$0x75316420]  ;;  %v492_v19 = vld.sshfl [vmem:[#allocation1 + $0x8] sm:$0xff pattern:$0x75316420] }
  0x95   : > { %837 = vmatpush.msk.msra.mxu0 %vm379_vm0, %v491_v18  ;;  %839 = vmatpush.msk.msra.mxu1 %vm379_vm0, %v492_v19  ;;  %v680_v18 = vld [vmem:[%s1077_s8] sm:$0xf] }
  0x96   : > { %838 = vmatmul.msk.f32.vlgmr.msra.gmra.mxu0 %vm493_vm8, %v482_v17  ;;  %840 = vmatmul.msk.f32.vlgmr.msra.gmra.mxu1 %vm493_vm8, %v482_v17  ;;  %v626_v19 = vpop.permute.xlu1 %625 }
  0x97   : > { %683 = vperm.xlu2 %886, %v680_v18  }
 0x113   : > { %v518_v21 = vpop.f32.mrf.mxu0  ;;  %v538_v22 = vpop.f32.mrf.mxu1 }
 0x114   : > { %v519_v23 = vadd.f32 %v518_v21, %v487_v20  ;;  %v539_v24 = vadd.f32 %v538_v22, %v487_v20 }
 0x116   : > { %v841_v25 = vmul.f32 -1.442695, %v519_v23  ;;  %v842_v26 = vmul.f32 -1.442695, %v539_v24 }
 0x118   : > { %893 = vpow2.f32 %v841_v25  ;;  %v679_v25 = vld [vmem:[%s1076_s7] sm:$0xf] }
 0x119   : > { %895 = vpow2.f32 %v842_v26 }
 0x11e   : > { %v894_v27 = vpop.eup %893 }
 0x11f   : > { %v896_v28 = vpop.eup %895  ;;  %v547_v29 = vadd.f32 1.0, %v894_v27  ;;  %v684_v27 = vpop.permute.xlu2 %683 }
 0x120   : > { %v548_v30 = vadd.f32 1.0, %v896_v28 }
 0x121   : > { %897 = vrcp.f32 %v547_v29  ;;  %v560_v36 = vand.u32 2147483648, %v547_v29  ;;  %v558_v39 = vand.u32 2147483647, %v547_v29  ;;  %vm554_vm11 = vweird.f32 %v547_v29 }
 0x122   : > { %899 = vrcp.f32 %v548_v30  ;;  %v575_v40 = vand.u32 2147483648, %v548_v30  ;;  %v573_v42 = vand.u32 2147483647, %v548_v30  ;;  %vm569_vm13 = vweird.f32 %v548_v30 }
 0x123   : > { %v561_v44 = vor.u32 1.1754944e-38, %v560_v36  ;;  %vm559_vm14 = vcmp.eq.f32.partialorder %v558_v39, 8.507059e+37 }
 0x124   : > { %v576_v47 = vor.u32 1.1754944e-38, %v575_v40  ;;  %vm574_vm1 = vcmp.eq.f32.partialorder %v573_v42, 8.507059e+37 }
 0x127   : > { %v898_v31 = vpop.eup %897 }
 0x128   : > { %v900_v32 = vpop.eup %899  ;;  %v550_v33 = vmul.f32 %v898_v31, %v547_v29  ;;  %vm555_vm9 = vweird.f32 %v898_v31 }
 0x129   : > { %v565_v34 = vmul.f32 %v900_v32, %v548_v30  ;;  %vm570_vm10 = vweird.f32 %v900_v32  ;;  %vm556_vm12 = vmor %vm554_vm11, %vm555_vm9 }
 0x12a   : > { %v551_v35 = vsub.f32 1.0, %v550_v33  ;;  %vm571_vm15 = vmor %vm569_vm13, %vm570_vm10 }
 0x12b   : > { %v566_v37 = vsub.f32 1.0, %v565_v34 }
 0x12c   : > { %v552_v38 = vmul.f32 %v898_v31, %v551_v35 }
 0x12d   : > { %v567_v41 = vmul.f32 %v900_v32, %v566_v37 }
 0x12e   : > { %v553_v43 = vadd.f32 %v898_v31, %v552_v38 }
 0x12f   : > { %v568_v45 = vadd.f32 %v900_v32, %v567_v41 }
 0x130   : > { %v557_v46 = vsel %vm556_vm12, %v898_v31, %v553_v43 }
 0x131   : > { %v562_v48 = vsel %vm559_vm14, %v561_v44, %v557_v46  ;;  %v572_v49 = vsel %vm571_vm15, %v900_v32, %v568_v45 }
 0x132   : > { %v579_v50 = vmul.f32 %v562_v48, %v519_v23  ;;  %v577_v51 = vsel %vm574_vm1, %v576_v47, %v572_v49 }
 0x133   : > { %v580_v52 = vmul.f32 %v577_v51, %v539_v24 }
 0x134   : > { %v843_v53 = vmul.f32 -1.442695, %v579_v50 }
 0x135   : > { %v844_v54 = vmul.f32 -1.442695, %v580_v52 }
 0x136   : > { %901 = vpow2.f32 %v843_v53 }
 0x137   : > { %903 = vpow2.f32 %v844_v54 }
 0x13c   : > { %v902_v55 = vpop.eup %901 }
 0x13d   : > { %v904_v56 = vpop.eup %903  ;;  %v587_v57 = vadd.f32 1.0, %v902_v55 }
 0x13e   : > { %v588_v58 = vadd.f32 1.0, %v904_v56 }
 0x13f   : > { %905 = vrcp.f32 %v587_v57  ;;  %v600_v0 = vand.u32 2147483648, %v587_v57  ;;  %v598_v3 = vand.u32 2147483647, %v587_v57  ;;  %vm594_vm4 = vweird.f32 %v587_v57 }
 0x140   : > { %907 = vrcp.f32 %v588_v58  ;;  %v615_v4 = vand.u32 2147483648, %v588_v58  ;;  %v613_v6 = vand.u32 2147483647, %v588_v58  ;;  %vm609_vm6 = vweird.f32 %v588_v58 }
 0x141   : > { %v601_v8 = vor.u32 1.1754944e-38, %v600_v0  ;;  %vm599_vm7 = vcmp.eq.f32.partialorder %v598_v3, 8.507059e+37 }
 0x142   : > { %v616_v11 = vor.u32 1.1754944e-38, %v615_v4  ;;  %vm614_vm10 = vcmp.eq.f32.partialorder %v613_v6, 8.507059e+37 }
 0x145   : > { %v906_v59 = vpop.eup %905 }
 0x146   : > { %v908_v60 = vpop.eup %907  ;;  %v590_v61 = vmul.f32 %v906_v59, %v587_v57  ;;  %vm595_vm2 = vweird.f32 %v906_v59 }
 0x147   : > { %v605_v62 = vmul.f32 %v908_v60, %v588_v58  ;;  %vm610_vm3 = vweird.f32 %v908_v60  ;;  %vm596_vm5 = vmor %vm594_vm4, %vm595_vm2 }
 0x148   : > { %v591_v63 = vsub.f32 1.0, %v590_v61  ;;  %vm611_vm9 = vmor %vm609_vm6, %vm610_vm3 }
 0x149   : > { %v606_v1 = vsub.f32 1.0, %v605_v62 }
 0x14a   : > { %v592_v2 = vmul.f32 %v906_v59, %v591_v63 }
 0x14b   : > { %v607_v5 = vmul.f32 %v908_v60, %v606_v1 }
 0x14c   : > { %v593_v7 = vadd.f32 %v906_v59, %v592_v2 }
 0x14d   : > { %v608_v9 = vadd.f32 %v908_v60, %v607_v5 }
 0x14e   : > { %v597_v10 = vsel %vm596_vm5, %v906_v59, %v593_v7 }
 0x14f   : > { %v602_v12 = vsel %vm599_vm7, %v601_v8, %v597_v10  ;;  %v612_v13 = vsel %vm611_vm9, %v908_v60, %v608_v9 }
 0x150   : > { %v619_v14 = vmul.f32 %v602_v12, %v579_v50  ;;  %v617_v15 = vsel %vm614_vm10, %v616_v11, %v612_v13 }
 0x151   : > { %v620_v17 = vmul.f32 %v617_v15, %v580_v52 }
 0x152   : > { %845 = vmatpush.msk.msra.mxu2 %vm379_vm0, %v619_v14 }
 0x153   : > { %847 = vmatpush.msk.msra.mxu3 %vm379_vm0, %v620_v17  ;;  %846 = vmatmul.msk.f32.vlgmr.msra.gmra.mxu2 %vm493_vm8, %v621_v16 }
 0x154   : > { %848 = vmatmul.msk.f32.vlgmr.msra.gmra.mxu3 %vm493_vm8, %v621_v16 }
 0x1d6   : > { %v654_v20 = vpop.f32.mrf.mxu2 }
 0x1d7   : > { %v655_v21 = vadd.f32 %v654_v20, %v626_v19  ;;  %v674_v22 = vpop.f32.mrf.mxu3 }
 0x1d8   : > { %v675_v23 = vadd.f32 %v674_v22, %v626_v19 }
 0x1d9   : > { %v677_v24 = vmul.f32 %v655_v21, %v579_v50 }
 0x1da   : > { %v678_v26 = vmul.f32 %v675_v23, %v580_v52 }
 0x1db   : > { %849 = vmatpush.msk.msrb.mxu0 %vm379_vm0, %v677_v24 }
 0x1dc   : > { %851 = vmatpush.msk.msrb.mxu1 %vm379_vm0, %v678_v26  ;;  %850 = vmatmul.msk.f32.vlgmr.msrb.gmra.mxu0 %vm493_vm8, %v679_v25 }
 0x1dd   : > { %852 = vmatmul.msk.f32.vlgmr.msrb.gmra.mxu1 %vm493_vm8, %v679_v25 }
 0x259   : > { %v712_v29 = vpop.f32.mrf.mxu0 }
 0x25a   : > { %v732_v28 = vpop.f32.mrf.mxu1  ;;  %v713_v32 = vadd.f32 %v712_v29, %v684_v27 }
 0x25b   : > { %v733_v30 = vadd.f32 %v732_v28, %v684_v27 }
 0x25d   : > { %v737_v31 = vrot.slane %v733_v30, 4 }
 0x25f   : > { %v738_v33 = vsel %vm379_vm0, %v713_v32, %v737_v31 }
 0x260   : > { %740 = vst [vmem:[%s370_s19] sm:$0xff] %v738_v33 }
 0x261 PF: > { %s19_s11 = sadd.s32 1, %s931_s11   ;;  %s1079_s30 = smov %s927_s10 }
 0x262   : > { %p16_p5 = scmp.ge.s32.totalorder %s19_s11, 4   ;;  %s1080_s10 = smov %s1082_s12 }
 0x264   :  { %18 = sbr.rel (!%p16_p5) target bundleno = 2 (0x2), region = 86 }

</bundles_post_ra>
